<compile_context>
chip_gen: v7x
topology: tpu7x:2x2x1
jax: 0.10.0
libtpu: 0.0.40
codegen_flags: <defaults>
</compile_context>

<pallas_src>
import jax
import jax.numpy as jnp
from jax import lax
from jax.experimental import pallas as pl
from jax.experimental.pallas import tpu as pltpu


def _leaky_relu(x, negative_slope=0.01):
    # matches torch.nn.functional.leaky_relu default slope (x > 0 agrees with torch at x == 0)
    return jnp.where(x > 0, x, negative_slope * x)


def _round_up(n, m):
    return ((n + m - 1) // m) * m


def mlp_kernel(x_ref, w1_ref, b1_ref, w2_ref, b2_ref, w3_ref, b3_ref, ot_ref):
    # x_ref: [tb, 16] f32 (natural layout); w_i bf16 in PyTorch [out, in] layout; b_i f32 [out, 1].
    x = x_ref[...].astype(w1_ref.dtype)                 # cast to MXU dtype in-VMEM

    # Layer 1: y1.T = W1 @ x.T -- contract the feature axes; Mosaic handles the in-VMEM transpose.
    h1 = lax.dot_general(w1_ref[...], x, (((1,), (1,)), ((), ())),
                         preferred_element_type=jnp.float32) + b1_ref[...]
    h1 = _leaky_relu(h1)                                # f32 [64, tb]

    h2 = jnp.dot(w2_ref[...], h1.astype(w2_ref.dtype),
                 preferred_element_type=jnp.float32) + b2_ref[...]
    h2 = _leaky_relu(h2)                                # f32 [64, tb]

    out = jnp.dot(w3_ref[...], h2.astype(w3_ref.dtype),
                  preferred_element_type=jnp.float32) + b3_ref[...]
    ot_ref[...] = out.astype(ot_ref.dtype)              # [4, tb], lane-dense store


def net_forward_t(x, prepared_params, *, tile_batch=1024):
    """Kernel-native forward.

    x: [batch, 16] f32.  Returns Q-values TRANSPOSED, shape [4, padded_batch] f32; valid columns
    are [:, :batch].  Throughput/latency-sensitive consumers (e.g. greedy-action argmax over
    axis 0) should use this directly and skip the output transpose pass.
    """
    w1, b1, w2, b2, w3, b3 = prepared_params
    batch, in_dim = x.shape
    out_dim = w3.shape[0]

    # Pad batch only to the 128-lane width (also buckets batch sizes -> fewer recompiles).
    padded = _round_up(batch, 128)
    tb = min(_round_up(tile_batch, 128), padded)
    if padded >= 256:
        # Guarantee >=2 grid steps so ("parallel",) actually lands work on both v7x TensorCores.
        tb = min(tb, _round_up(pl.cdiv(padded, 2), 128))
    steps = pl.cdiv(padded, tb)

    if padded != batch:
        x = jnp.pad(x, ((0, padded - batch), (0, 0)))   # tiny: at most 127 rows of f32[16]

    # x tile pipelined along batch; deepen buffering when tiles are shallow and the grid is long.
    x_spec_kwargs = {}
    if tb <= 512 and steps >= 3:
        x_spec_kwargs["pipeline_mode"] = pl.Buffered(3)
    x_spec = pl.BlockSpec((tb, in_dim), lambda i: (i, 0), **x_spec_kwargs)

    # Weights/biases: one full block + constant index map -> VMEM-resident across grid steps.
    resident = lambda arr: pl.BlockSpec(arr.shape, lambda i: (0, 0))

    out_t = pl.pallas_call(
        mlp_kernel,
        out_shape=jax.ShapeDtypeStruct((out_dim, padded), jnp.float32),
        grid=(steps,),
        in_specs=[
            x_spec,
            resident(w1), resident(b1),
            resident(w2), resident(b2),
            resident(w3), resident(b3),
        ],
        out_specs=pl.BlockSpec((out_dim, tb), lambda i: (0, i)),
        compiler_params=pltpu.CompilerParams(
            dimension_semantics=("parallel",)),          # megacore sharding on v7x
    )(x, w1, b1, w2, b2, w3, b3)
    return out_t


def net_forward(x, prepared_params, *, tile_batch=1024):
    """nn.Module-compatible forward: x [batch, 16] f32 -> [batch, 4] f32."""
    batch = x.shape[0]
    qt = net_forward_t(x, prepared_params, tile_batch=tile_batch)
    # The final transpose is kept only for API parity with Net.forward; prefer net_forward_t /
    # predict() when the [4, B] layout is acceptable (avoids one read+write pass over the output).
    return qt[:, :batch].T


def predict(state, prepared_params):
    """Greedy action = argmax over the 4 Q-values (matches Net.predict), taken directly on the
    kernel-native transposed output (no output re-transpose pass)."""
    x = jnp.asarray(state, jnp.float32).reshape(1, -1)
    qt = net_forward_t(x, prepared_params)
    return jnp.argmax(qt[:, 0])


def init_params(key):
    """Deterministic init mimicking nn.Linear default (uniform +/- 1/sqrt(fan_in)).

    Weights in PyTorch layout [out_features, in_features] f32; biases [out_features] f32
    (exactly what a torch state_dict would provide)."""
    dims = [(16, 64), (64, 64), (64, 4)]
    params = []
    for fan_in, fan_out in dims:
        key, kw, kb = jax.random.split(key, 3)
        bound = 1.0 / (fan_in ** 0.5)
        w = jax.random.uniform(kw, (fan_out, fan_in), jnp.float32, -bound, bound)
        b = jax.random.uniform(kb, (fan_out,), jnp.float32, -bound, bound)
        params.extend([w, b])
    return tuple(params)


def prepare_params(params, operand_dtype=jnp.bfloat16):
    """One-time prep: pre-cast weights to the MXU operand dtype, reshape biases to [out, 1] f32.
    Do this once at init so no per-forward casts/dispatches are needed."""
    w1, b1, w2, b2, w3, b3 = params
    prepared = []
    for w, b in ((w1, b1), (w2, b2), (w3, b3)):
        prepared.append(w.astype(operand_dtype))
        prepared.append(jnp.asarray(b, jnp.float32).reshape(-1, 1))
    return tuple(prepared)


def reference_forward(x, prepared_params):
    """Pure-JAX reference with the same dtype policy as the kernel (bf16 MXU, f32 accum/elemwise)."""
    w1, b1, w2, b2, w3, b3 = prepared_params
    xt = x.T.astype(w1.dtype)
    h1 = _leaky_relu(jnp.dot(w1, xt, preferred_element_type=jnp.float32) + b1)
    h2 = _leaky_relu(jnp.dot(w2, h1.astype(w2.dtype), preferred_element_type=jnp.float32) + b2)
    out = jnp.dot(w3, h2.astype(w3.dtype), preferred_element_type=jnp.float32) + b3
    return out.T  # [batch, 4]


if __name__ == "__main__":
    key = jax.random.PRNGKey(0)
    key, kparams, kx, kx2 = jax.random.split(key, 4)

    params = prepare_params(init_params(kparams))        # bf16 weights pre-cast once

    # Small DQN-style batch (acts path): batch=2, 16 features.
    x = jax.random.normal(kx, (2, 16), dtype=jnp.float32)
    out = jax.block_until_ready(net_forward(x, params))
    ref = reference_forward(x, params)
    assert out.shape == (2, 4), out.shape
    assert jnp.allclose(out, ref, atol=1e-2, rtol=1e-2), "mismatch vs reference (batch=2)"

    # Learn-path style batch: exercises the multi-step batch grid (2 steps -> both TCs on v7x).
    x2 = jax.random.normal(kx2, (512, 16), dtype=jnp.float32)
    out2 = jax.block_until_ready(net_forward(x2, params))
    ref2 = reference_forward(x2, params)
    assert out2.shape == (512, 4), out2.shape
    assert jnp.allclose(out2, ref2, atol=1e-2, rtol=1e-2), "mismatch vs reference (batch=512)"

    # Greedy action from the kernel-native transposed output (no output transpose pass).
    action = int(jax.block_until_ready(predict(x[0], params)))
    assert 0 <= action < 4, action

    # TODO(synk): optimizer / backprop (cross_entropy + Adam) / replay_memory are training state,
    # not part of the forward pass, and are not translated here.
    print("KERNEL_OK")
</pallas_src>

<mosaic_0001>
module attributes {stable_mosaic.version = 11 : i64} {
  func.func @mlp_kernel(%arg0: i32, %arg1: memref<128x16xf32, #tpu.memory_space<vmem>>, %arg2: memref<64x16xbf16, #tpu.memory_space<vmem>>, %arg3: memref<64x1xf32, #tpu.memory_space<vmem>>, %arg4: memref<64x64xbf16, #tpu.memory_space<vmem>>, %arg5: memref<64x1xf32, #tpu.memory_space<vmem>>, %arg6: memref<4x64xbf16, #tpu.memory_space<vmem>>, %arg7: memref<4x1xf32, #tpu.memory_space<vmem>>, %arg8: memref<4x128xf32, #tpu.memory_space<vmem>>) attributes {dimension_semantics = [#tpu.dimension_semantics<parallel>], iteration_bounds = array<i64: 1>, scalar_prefetch = 0 : i64, scratch_operands = 0 : i64, tpu.core_type = #tpu.core_type<tc>, window_params = [{transform_indices = @transform_0, window_bounds = array<i64: 128, 16>}, {pipeline_mode = #tpu.pipeline_mode<synchronous>, transform_indices = @transform_1, window_bounds = array<i64: 64, 16>}, {pipeline_mode = #tpu.pipeline_mode<synchronous>, transform_indices = @transform_2, window_bounds = array<i64: 64, 1>}, {pipeline_mode = #tpu.pipeline_mode<synchronous>, transform_indices = @transform_3, window_bounds = array<i64: 64, 64>}, {pipeline_mode = #tpu.pipeline_mode<synchronous>, transform_indices = @transform_4, window_bounds = array<i64: 64, 1>}, {pipeline_mode = #tpu.pipeline_mode<synchronous>, transform_indices = @transform_5, window_bounds = array<i64: 4, 64>}, {pipeline_mode = #tpu.pipeline_mode<synchronous>, transform_indices = @transform_6, window_bounds = array<i64: 4, 1>}, {transform_indices = @transform_7, window_bounds = array<i64: 4, 128>}]} {
    %c0 = arith.constant 0 : index
    %c0_0 = arith.constant 0 : index
    %0 = vector.load %arg1[%c0, %c0_0] : memref<128x16xf32, #tpu.memory_space<vmem>>, vector<128x16xf32>
    %1 = arith.truncf %0 : vector<128x16xf32> to vector<128x16xbf16>
    %c0_1 = arith.constant 0 : index
    %c0_2 = arith.constant 0 : index
    %2 = vector.load %arg2[%c0_1, %c0_2] : memref<64x16xbf16, #tpu.memory_space<vmem>>, vector<64x16xbf16>
    %cst = arith.constant dense<0.000000e+00> : vector<64x128xf32>
    %3 = tpu.matmul %2, %1, %cst {dimension_numbers = #tpu.dot_dimension_numbers<[1], [1], [0], [0], [0, 0, 1, 0], [], []>} : vector<64x16xbf16>, vector<128x16xbf16>, vector<64x128xf32> -> vector<64x128xf32>
    %c0_3 = arith.constant 0 : index
    %c0_4 = arith.constant 0 : index
    %4 = vector.load %arg3[%c0_3, %c0_4] : memref<64x1xf32, #tpu.memory_space<vmem>>, vector<64x1xf32>
    %5 = vector.broadcast %4 : vector<64x1xf32> to vector<64x128xf32>
    %6 = arith.addf %3, %5 : vector<64x128xf32>
    %cst_5 = arith.constant 0.000000e+00 : f32
    %7 = vector.broadcast %cst_5 : f32 to vector<64x128xf32>
    %8 = arith.cmpf ogt, %6, %7 : vector<64x128xf32>
    %cst_6 = arith.constant 0.00999999977 : f32
    %9 = vector.broadcast %cst_6 : f32 to vector<64x128xf32>
    %10 = arith.mulf %9, %6 : vector<64x128xf32>
    %11 = arith.select %8, %6, %10 : vector<64x128xi1>, vector<64x128xf32>
    %c0_7 = arith.constant 0 : index
    %c0_8 = arith.constant 0 : index
    %12 = vector.load %arg4[%c0_7, %c0_8] : memref<64x64xbf16, #tpu.memory_space<vmem>>, vector<64x64xbf16>
    %13 = arith.truncf %11 : vector<64x128xf32> to vector<64x128xbf16>
    %cst_9 = arith.constant dense<0.000000e+00> : vector<64x128xf32>
    %14 = tpu.matmul %12, %13, %cst_9 {dimension_numbers = #tpu.dot_dimension_numbers<[1], [0], [0], [1], [0, 0, 1, 1], [], []>} : vector<64x64xbf16>, vector<64x128xbf16>, vector<64x128xf32> -> vector<64x128xf32>
    %c0_10 = arith.constant 0 : index
    %c0_11 = arith.constant 0 : index
    %15 = vector.load %arg5[%c0_10, %c0_11] : memref<64x1xf32, #tpu.memory_space<vmem>>, vector<64x1xf32>
    %16 = vector.broadcast %15 : vector<64x1xf32> to vector<64x128xf32>
    %17 = arith.addf %14, %16 : vector<64x128xf32>
    %cst_12 = arith.constant 0.000000e+00 : f32
    %18 = vector.broadcast %cst_12 : f32 to vector<64x128xf32>
    %19 = arith.cmpf ogt, %17, %18 : vector<64x128xf32>
    %cst_13 = arith.constant 0.00999999977 : f32
    %20 = vector.broadcast %cst_13 : f32 to vector<64x128xf32>
    %21 = arith.mulf %20, %17 : vector<64x128xf32>
    %22 = arith.select %19, %17, %21 : vector<64x128xi1>, vector<64x128xf32>
    %c0_14 = arith.constant 0 : index
    %c0_15 = arith.constant 0 : index
    %23 = vector.load %arg6[%c0_14, %c0_15] : memref<4x64xbf16, #tpu.memory_space<vmem>>, vector<4x64xbf16>
    %24 = arith.truncf %22 : vector<64x128xf32> to vector<64x128xbf16>
    %cst_16 = arith.constant dense<0.000000e+00> : vector<4x128xf32>
    %25 = tpu.matmul %23, %24, %cst_16 {dimension_numbers = #tpu.dot_dimension_numbers<[1], [0], [0], [1], [0, 0, 1, 1], [], []>} : vector<4x64xbf16>, vector<64x128xbf16>, vector<4x128xf32> -> vector<4x128xf32>
    %c0_17 = arith.constant 0 : index
    %c0_18 = arith.constant 0 : index
    %26 = vector.load %arg7[%c0_17, %c0_18] : memref<4x1xf32, #tpu.memory_space<vmem>>, vector<4x1xf32>
    %27 = vector.broadcast %26 : vector<4x1xf32> to vector<4x128xf32>
    %28 = arith.addf %25, %27 : vector<4x128xf32>
    %c0_19 = arith.constant 0 : index
    %c0_20 = arith.constant 0 : index
    %29 = vector.load %arg8[%c0_19, %c0_20] : memref<4x128xf32, #tpu.memory_space<vmem>>, vector<4x128xf32>
    tpu.vector_store %arg8[%c0_19, %c0_20], %28 {strides = array<i32>} : memref<4x128xf32, #tpu.memory_space<vmem>>, vector<4x128xf32>,
    return
  }
  func.func @transform_0(%arg0: i32) -> (i32, i32) {
    %c0_i32 = arith.constant 0 : i32
    %c0_i32_0 = arith.constant 0 : i32
    return %arg0, %c0_i32 : i32, i32
  }
  func.func @transform_1(%arg0: i32) -> (i32, i32) {
    %c0_i32 = arith.constant 0 : i32
    %c0_i32_0 = arith.constant 0 : i32
    %c0_i32_1 = arith.constant 0 : i32
    return %c0_i32, %c0_i32_0 : i32, i32
  }
  func.func @transform_2(%arg0: i32) -> (i32, i32) {
    %c0_i32 = arith.constant 0 : i32
    %c0_i32_0 = arith.constant 0 : i32
    %c0_i32_1 = arith.constant 0 : i32
    return %c0_i32, %c0_i32_0 : i32, i32
  }
  func.func @transform_3(%arg0: i32) -> (i32, i32) {
    %c0_i32 = arith.constant 0 : i32
    %c0_i32_0 = arith.constant 0 : i32
    %c0_i32_1 = arith.constant 0 : i32
    return %c0_i32, %c0_i32_0 : i32, i32
  }
  func.func @transform_4(%arg0: i32) -> (i32, i32) {
    %c0_i32 = arith.constant 0 : i32
    %c0_i32_0 = arith.constant 0 : i32
    %c0_i32_1 = arith.constant 0 : i32
    return %c0_i32, %c0_i32_0 : i32, i32
  }
  func.func @transform_5(%arg0: i32) -> (i32, i32) {
    %c0_i32 = arith.constant 0 : i32
    %c0_i32_0 = arith.constant 0 : i32
    %c0_i32_1 = arith.constant 0 : i32
    return %c0_i32, %c0_i32_0 : i32, i32
  }
  func.func @transform_6(%arg0: i32) -> (i32, i32) {
    %c0_i32 = arith.constant 0 : i32
    %c0_i32_0 = arith.constant 0 : i32
    %c0_i32_1 = arith.constant 0 : i32
    return %c0_i32, %c0_i32_0 : i32, i32
  }
  func.func @transform_7(%arg0: i32) -> (i32, i32) {
    %c0_i32 = arith.constant 0 : i32
    %c0_i32_0 = arith.constant 0 : i32
    return %c0_i32, %arg0 : i32, i32
  }
}

</mosaic_0001>

<bundles_post_ra>
// kernel: tpu_custom_call.1
= control target key start
LH: loop header
LB: loop body
LE: loop exit
PB: predicated region body
PF: predicated region fallthrough
CT: control target
= control target key end

     0   :  { %vm128_vm0 = vcmask 130048   ;;  %v645_v5 = vmov 0   ;;  %s852_s0 = inlined_call_operand.vmem [shape: f32[128,16], index: 0, kind: input, shape index: {}]   ;;  %s853_s1 = inlined_call_operand.vmem [shape: bf16[64,16], index: 1, kind: input, shape index: {}]   ;;  %s854_s2 = inlined_call_operand.vmem [shape: f32[64,1], index: 2, kind: input, shape index: {}]   ;;  %s855_s3 = inlined_call_operand.vmem [shape: bf16[64,64], index: 3, kind: input, shape index: {}]   ;;  %s856_s4 = inlined_call_operand.vmem [shape: f32[64,1], index: 4, kind: input, shape index: {}]   ;;  %s857_s5 = inlined_call_operand.vmem [shape: bf16[4,64], index: 5, kind: input, shape index: {}]   ;;  %s858_s6 = inlined_call_operand.vmem [shape: f32[4,1], index: 6, kind: input, shape index: {}]   ;;  %s859_s7 = inlined_call_operand.hbm [shape: f32[4,128], index: 7, kind: output, shape index: {}]  }
   0x1   :  { %v28_v0 = vld [vmem:[%s852_s0] sm:$0xff]  ;;  %v29_v1 = vld [vmem:[%s852_s0 + $0x8] sm:$0xff]  ;;  %v30_v2 = vld [vmem:[%s852_s0 + $0x10] sm:$0xff]  ;;  %611 = vset.pattern.permute.xlu0 %v645_v5  ;;  %612 = vset.pattern.permute.xlu1 %v645_v5 }
   0x2   :  { %v44_v3 = vpack.c.bf16 %v29_v1, %v28_v0  ;;  %v31_v4 = vld [vmem:[%s852_s0 + $0x18] sm:$0xff]  ;;  %v32_v8 = vld [vmem:[%s852_s0 + $0x20] sm:$0xff]  ;;  %v33_v9 = vld [vmem:[%s852_s0 + $0x28] sm:$0xff] }
   0x3   :  { %v45_v6 = vpack.c.bf16 %v31_v4, %v30_v2  ;;  %v613_v10 = vld [vmem:[%s853_s1] sm:$0xff]   ;;  %v46_v12 = vpack.c.bf16 %v33_v9, %v32_v8  ;;  %v62_v14 = vld [vmem:[%s854_s2 + $0x10] sm:$0xff]  ;;  %v61_v15 = vld [vmem:[%s854_s2 + $0x8] sm:$0xff] }
   0x4   :  { %599 = vmatprep.subr.msk.bf16.mxu0 %vm128_vm0, %v44_v3  ;;  %v142_v7 = vsel %vm128_vm0, %v44_v3, 0  ;;  %563 = vmatprep.mubr.msk.bf16.mxu0 %vm128_vm0, %v613_v10  ;;  %v60_v13 = vld [vmem:[%s854_s2] sm:$0xff]  ;;  %v63_v16 = vld [vmem:[%s854_s2 + $0x18] sm:$0xff]  ;;  %v34_v17 = vld [vmem:[%s852_s0 + $0x30] sm:$0xff] }
   0x5   :  { %548 = vmatpush3.bf16.xpose.msra.mxu0 %v142_v7  ;;  %v145_v11 = vsel %vm128_vm0, %v45_v6, 0  ;;  %70 = vperm.xlu0 %611, %v60_v13   ;;  %v148_v18 = vsel %vm128_vm0, %v46_v12, 0  ;;  %v35_v19 = vld [vmem:[%s852_s0 + $0x38] sm:$0xff]  ;;  %v64_v20 = vld [vmem:[%s854_s2 + $0x20] sm:$0xff]  ;;  %v65_v21 = vld [vmem:[%s854_s2 + $0x28] sm:$0xff] }
   0x6   :  { %600 = vmatprep.subr.msk.bf16.mxu0 %vm128_vm0, %v45_v6  ;;  %80 = vperm.xlu1 %612, %v62_v14   ;;  %v47_v22 = vpack.c.bf16 %v35_v19, %v34_v17 }
   0x9   :  { %75 = vperm.xlu0 %611, %v61_v15  }
   0xa   :  { %85 = vperm.xlu1 %612, %v63_v16  }
   0xd   :  { %550 = vmatpush3.bf16.xpose.msra.mxu0 %v145_v11 }
   0xe   :  { %601 = vmatprep.subr.msk.bf16.mxu0 %vm128_vm0, %v46_v12 }
   0xf   :  { %12 = vsyncpa [#allocation3], 0  ;;  %90 = vperm.xlu0 %611, %v64_v20   ;;  %v66_v23 = vld [vmem:[%s854_s2 + $0x30] sm:$0xff]  ;;  %95 = vperm.xlu1 %612, %v65_v21   ;;  %v67_v24 = vld [vmem:[%s854_s2 + $0x38] sm:$0xff]  ;;  %v151_v29 = vsel %vm128_vm0, %v47_v22, 0  ;;  %vm334_vm1 = vcmask 523264  }
  0x10   :  { %v36_v25 = vld [vmem:[%s852_s0 + $0x40] sm:$0xff]  ;;  %v37_v26 = vld [vmem:[%s852_s0 + $0x48] sm:$0xff]  ;;  %v268_v31 = vld [vmem:[%s856_s4 + $0x10] sm:$0xff]  ;;  %vm647_vm10 = vmmov 0   ;;  %s648_s9 = smov [#allocation2]  }
  0x11   :  { %v266_v27 = vld [vmem:[%s856_s4] sm:$0xff]  ;;  %v267_v28 = vld [vmem:[%s856_s4 + $0x8] sm:$0xff]  ;;  %v48_v30 = vpack.c.bf16 %v37_v26, %v36_v25  ;;  %v269_v32 = vld [vmem:[%s856_s4 + $0x18] sm:$0xff]  ;;  %s497_s10 = sshll.u32 %s648_s9, 4  ;;  %s498_s10 = int_to_ptr.vmem [resolvable:$true] %s497_s10 }
  0x12   :  { %v38_v33 = vld [vmem:[%s852_s0 + $0x50] sm:$0xff]  ;;  %v39_v34 = vld [vmem:[%s852_s0 + $0x58] sm:$0xff]  ;;  %v270_v35 = vld [vmem:[%s856_s4 + $0x20] sm:$0xff]  ;;  %s621_s11 = scalar_lea.vmem %s498_s10, 64  ;;  %p626_p1 = scmp.lt.s32.totalorder %s498_s10, %s498_s10 }
  0x13   :  { %100 = vperm.xlu0 %611, %v66_v23   ;;  %105 = vperm.xlu1 %612, %v67_v24   ;;  %v271_v36 = vld [vmem:[%s856_s4 + $0x28] sm:$0xff]  ;;  %v154_v37 = vsel %vm128_vm0, %v48_v30, 0  ;;  %v49_v38 = vpack.c.bf16 %v39_v34, %v38_v33  ;;  %v272_v39 = vld [vmem:[%s856_s4 + $0x30] sm:$0xff]  ;;  %v273_v40 = vld [vmem:[%s856_s4 + $0x38] sm:$0xff]  ;;  %p622_p0 = scmp.ne.s32.totalorder %s498_s10, %s621_s11  ;;  %p627_p2 = scmp.lt.s32.totalorder %s621_s11, %s621_s11 }
  0x14   :  { %v40_v41 = vld [vmem:[%s852_s0 + $0x60] sm:$0xff]  ;;  %v41_v42 = vld [vmem:[%s852_s0 + $0x68] sm:$0xff]  ;;  %v42_v46 = vld [vmem:[%s852_s0 + $0x70] sm:$0xff] }
  0x15   :  { %552 = vmatpush3.bf16.xpose.msra.mxu0 %v148_v18  ;;  %v441_v43 = vld [vmem:[%s858_s6] sm:$0xf]  ;;  %v157_v44 = vsel %vm128_vm0, %v49_v38, 0  ;;  %v50_v45 = vpack.c.bf16 %v41_v42, %v40_v41  ;;  %v43_v47 = vld [vmem:[%s852_s0 + $0x78] sm:$0xff]  ;;  %v614_v51 = vld [vmem:[%s853_s1 + $0x8] sm:$0xff]   ;;  %p628_p3 = por %p627_p2, %p626_p1 }
  0x16   :  { %602 = vmatprep.subr.msk.bf16.mxu0 %vm128_vm0, %v47_v22  ;;  %v51_v49 = vpack.c.bf16 %v43_v47, %v42_v46  ;;  %v615_v52 = vld [vmem:[%s853_s1 + $0x10] sm:$0xff]   ;;  %v616_v53 = vld [vmem:[%s853_s1 + $0x18] sm:$0xff]   ;;  %v617_v54 = vld [vmem:[%s855_s3] sm:$0xff]  }
  0x17   :  { %276 = vperm.xlu0 %611, %v266_v27   ;;  %281 = vperm.xlu1 %612, %v267_v28   ;;  %v160_v48 = vsel %vm128_vm0, %v50_v45, 0  ;;  %p629_p4 = pnand %p628_p3, %p622_p0 }
  0x18   :  { %v163_v50 = vsel %vm128_vm0, %v51_v49, 0  ;;  %579 = vmatprep.mubr.msk.bf16.mxu1 %vm334_vm1, %v617_v54 }
  0x1b   :  { %286 = vperm.xlu0 %611, %v268_v31   ;;  %291 = vperm.xlu1 %612, %v269_v32  }
  0x1d   :  { %554 = vmatpush3.bf16.xpose.msra.mxu0 %v151_v29 }
  0x1e   :  { %603 = vmatprep.subr.msk.bf16.mxu0 %vm128_vm0, %v48_v30 }
  0x1f   :  { %296 = vperm.xlu0 %611, %v270_v35   ;;  %301 = vperm.xlu1 %612, %v271_v36   ;;  %v618_v35 = vld [vmem:[%s855_s3 + $0x8] sm:$0xff]   ;;  %v619_v36 = vld [vmem:[%s855_s3 + $0x10] sm:$0xff]  }
  0x23   :  { %306 = vperm.xlu0 %611, %v272_v39   ;;  %311 = vperm.xlu1 %612, %v273_v40  }
  0x25   :  { %556 = vmatpush3.bf16.xpose.msra.mxu0 %v154_v37  ;;  %v620_v37 = vld [vmem:[%s855_s3 + $0x18] sm:$0xff]  }
  0x26   :  { %604 = vmatprep.subr.msk.bf16.mxu0 %vm128_vm0, %v49_v38  ;;  %v646_v38 = vmov 0.0  }
  0x27   :  { %444 = vperm.xlu0 %611, %v441_v43  }
  0x2d   :  { %558 = vmatpush3.bf16.xpose.msra.mxu0 %v157_v44 }
  0x2e   :  { %605 = vmatprep.subr.msk.bf16.mxu0 %vm128_vm0, %v50_v45 }
  0x35   :  { %560 = vmatpush3.bf16.xpose.msra.mxu0 %v160_v48 }
  0x36   :  { %606 = vmatprep.subr.msk.bf16.mxu0 %vm128_vm0, %v51_v49 }
  0x3d   :  { %562 = vmatpush3.bf16.xpose.msra.mxu0 %v163_v50 }
  0x44   :  { %564 = vmatmul.mubr.msk.bf16.vlgmr.msra.gmra.mrb[0].mxu0 %vm128_vm0, %v614_v51 }
  0x45   :  { %567 = vmatprep.mubr.msk.bf16.mxu0 %vm128_vm0, %v615_v52 }
  0x4c   :  { %568 = vmatmul.mubr.msk.bf16.gmra.mrb[4].mxu0 %vm128_vm0, %v616_v53 }
  0x84   :  { %v71_v55 = vpop.permute.xlu0 %70 }
  0x85   :  { %v81_v56 = vpop.permute.xlu1 %80 }
  0x88   :  { %v76_v57 = vpop.permute.xlu0 %75 }
  0x89   :  { %v86_v58 = vpop.permute.xlu1 %85 }
  0x8e   :  { %v91_v62 = vpop.permute.xlu0 %90  ;;  %v96_v4 = vpop.permute.xlu1 %95 }
  0x92   :  { %v101_v11 = vpop.permute.xlu0 %100  ;;  %v106_v19 = vpop.permute.xlu1 %105 }
  0x96   :  { %v277_v39 = vpop.permute.xlu0 %276  ;;  %v282_v40 = vpop.permute.xlu1 %281 }
  0x9a   :  { %v287_v41 = vpop.permute.xlu0 %286  ;;  %v292_v42 = vpop.permute.xlu1 %291 }
  0x9e   :  { %v297_v46 = vpop.permute.xlu0 %296  ;;  %v302_v52 = vpop.permute.xlu1 %301 }
 0x117   :  { %v565_v59 = vpop.f32.mrb[0].mxu0 }
 0x118   :  { %v208_v60 = vadd.f32 %v565_v59, %v81_v56  ;;  %v199_v61 = vpop.f32.mrb[1].mxu0  ;;  %v307_v59 = vpop.permute.xlu0 %306 }
 0x119   :  { %v200_v63 = vadd.f32 %v199_v61, %v71_v55  ;;  %v566_v0 = vpop.f32.mrb[2].mxu0 }
 0x11a   :  { %v240_v1 = vmul.f32 0.01, %v208_v60  ;;  %v211_v2 = vadd.f32 %v566_v0, %v86_v58  ;;  %v202_v3 = vpop.f32.mrb[3].mxu0  ;;  %vm232_vm2 = vcmp.gt.f32.partialorder %v208_v60, 0.0 }
 0x11b   :  { %v238_v5 = vmul.f32 0.01, %v200_v63  ;;  %v203_v6 = vadd.f32 %v202_v3, %v76_v57  ;;  %vm230_vm4 = vcmp.gt.f32.partialorder %v200_v63, 0.0  ;;  %v312_v3 = vpop.permute.xlu1 %311 }
 0x11c   :  { %vm233_vm3 = vcmp.gt.f32.partialorder %v211_v2, 0.0  ;;  %v241_v7 = vmul.f32 0.01, %v211_v2  ;;  %v248_v9 = vsel %vm232_vm2, %v208_v60, %v240_v1 }
 0x11d   :  { %v239_v8 = vmul.f32 0.01, %v203_v6  ;;  %vm231_vm5 = vcmp.gt.f32.partialorder %v203_v6, 0.0  ;;  %v246_v13 = vsel %vm230_vm4, %v200_v63, %v238_v5 }
 0x11e   :  { %v249_v10 = vsel %vm233_vm3, %v211_v2, %v241_v7 }
 0x11f   :  { %v569_v12 = vpop.f32.mrb[4].mxu0  ;;  %v247_v14 = vsel %vm231_vm5, %v203_v6, %v239_v8  ;;  %v263_v15 = vpack.c.bf16 %v249_v10, %v248_v9 }
 0x120   :  { %v224_v16 = vadd.f32 %v569_v12, %v101_v11  ;;  %v215_v17 = vpop.f32.mrb[5].mxu0  ;;  %v262_v18 = vpack.c.bf16 %v247_v14, %v246_v13 }
 0x121   :  { %v216_v20 = vadd.f32 %v215_v17, %v91_v62  ;;  %v570_v21 = vpop.f32.mrb[6].mxu0 }
 0x122   :  { %v244_v22 = vmul.f32 0.01, %v224_v16  ;;  %v227_v23 = vadd.f32 %v570_v21, %v106_v19  ;;  %v218_v24 = vpop.f32.mrb[7].mxu0  ;;  %571 = vmatprep.subr.bf16.mxu1 %v262_v18  ;;  %vm236_vm6 = vcmp.gt.f32.partialorder %v224_v16, 0.0  ;;  %v436_v19 = vld [vmem:[%s857_s5] sm:$0x3] }
 0x123   :  { %v242_v25 = vmul.f32 0.01, %v216_v20  ;;  %v219_v26 = vadd.f32 %v218_v24, %v96_v4  ;;  %572 = vmatpush3.bf16.msra.mxu1 %v262_v18  ;;  %vm234_vm7 = vcmp.gt.f32.partialorder %v216_v20, 0.0 }
 0x124   :  { %vm237_vm8 = vcmp.gt.f32.partialorder %v227_v23, 0.0  ;;  %v245_v27 = vmul.f32 0.01, %v227_v23  ;;  %573 = vmatprep.subr.bf16.mxu1 %v263_v15  ;;  %v252_v29 = vsel %vm236_vm6, %v224_v16, %v244_v22 }
 0x125   :  { %vm235_vm9 = vcmp.gt.f32.partialorder %v219_v26, 0.0  ;;  %v243_v28 = vmul.f32 0.01, %v219_v26  ;;  %v250_v31 = vsel %vm234_vm7, %v216_v20, %v242_v25  ;;  %v445_v20 = vpop.permute.xlu0 %444 }
 0x126   :  { %v253_v30 = vsel %vm237_vm8, %v227_v23, %v245_v27 }
 0x127   :  { %574 = vmatpush3.bf16.msra.mxu1 %v263_v15  ;;  %v251_v32 = vsel %vm235_vm9, %v219_v26, %v243_v28  ;;  %v265_v33 = vpack.c.bf16 %v253_v30, %v252_v29 }
 0x128   :  { %v264_v34 = vpack.c.bf16 %v251_v32, %v250_v31 }
 0x12a   :  { %575 = vmatprep.subr.bf16.mxu1 %v264_v34 }
 0x12b   :  { %576 = vmatpush3.bf16.msra.mxu1 %v264_v34 }
 0x12c   :  { %577 = vmatprep.subr.bf16.mxu1 %v265_v33 }
 0x12f   :  { %578 = vmatpush3.bf16.msra.mxu1 %v265_v33 }
 0x130   :  { %587 = vmatprep.subr.bf16.mxu1 %v646_v38 }
 0x132   :  { %580 = vmatmul.mubr.msk.bf16.vlgmr.msra.gmra.mrb[0].mxu1 %vm334_vm1, %v618_v35 }
 0x133   :  { %583 = vmatprep.mubr.msk.bf16.mxu1 %vm334_vm1, %v619_v36 }
 0x13a   :  { %584 = vmatmul.mubr.msk.bf16.gmra.mrb[4].mxu1 %vm334_vm1, %v620_v37 }
 0x13b   :  { %595 = vmatprep.mubr.msk.bf16.mxu1 %vm647_vm10, %v646_v38 }
 0x205   :  { %v581_v43 = vpop.f32.mrb[0].mxu1 }
 0x206   :  { %v390_v44 = vadd.f32 %v581_v43, %v287_v41  ;;  %v381_v45 = vpop.f32.mrb[1].mxu1 }
 0x207   :  { %v382_v47 = vadd.f32 %v381_v45, %v277_v39  ;;  %v582_v48 = vpop.f32.mrb[2].mxu1 }
 0x208   :  { %v422_v49 = vmul.f32 0.01, %v390_v44  ;;  %v393_v50 = vadd.f32 %v582_v48, %v292_v42  ;;  %v384_v51 = vpop.f32.mrb[3].mxu1  ;;  %vm414_vm11 = vcmp.gt.f32.partialorder %v390_v44, 0.0 }
 0x209   :  { %v420_v53 = vmul.f32 0.01, %v382_v47  ;;  %v385_v54 = vadd.f32 %v384_v51, %v282_v40  ;;  %vm412_vm12 = vcmp.gt.f32.partialorder %v382_v47, 0.0 }
 0x20a   :  { %vm415_vm13 = vcmp.gt.f32.partialorder %v393_v50, 0.0  ;;  %v423_v55 = vmul.f32 0.01, %v393_v50  ;;  %v430_v57 = vsel %vm414_vm11, %v390_v44, %v422_v49 }
 0x20b   :  { %vm413_vm14 = vcmp.gt.f32.partialorder %v385_v54, 0.0  ;;  %v421_v56 = vmul.f32 0.01, %v385_v54  ;;  %v428_v60 = vsel %vm412_vm12, %v382_v47, %v420_v53 }
 0x20c   :  { %v431_v58 = vsel %vm415_vm13, %v393_v50, %v423_v55 }
 0x20d   :  { %v438_v61 = vpack.c.bf16 %v431_v58, %v430_v57  ;;  %v429_v62 = vsel %vm413_vm14, %v385_v54, %v421_v56  ;;  %v585_v63 = vpop.f32.mrb[4].mxu1 }
 0x20e   :  { %v437_v0 = vpack.c.bf16 %v429_v62, %v428_v60  ;;  %v406_v1 = vadd.f32 %v585_v63, %v307_v59  ;;  %v397_v2 = vpop.f32.mrb[5].mxu1 }
 0x20f   :  { %v398_v4 = vadd.f32 %v397_v2, %v297_v46  ;;  %v586_v5 = vpop.f32.mrb[6].mxu1 }
 0x210   :  { %v426_v6 = vmul.f32 0.01, %v406_v1  ;;  %v409_v7 = vadd.f32 %v586_v5, %v312_v3  ;;  %v400_v8 = vpop.f32.mrb[7].mxu1  ;;  %588 = vmatpush3.bf16.msra.mxu1 %v437_v0  ;;  %vm418_vm15 = vcmp.gt.f32.partialorder %v406_v1, 0.0 }
 0x211   :  { %v424_v9 = vmul.f32 0.01, %v398_v4  ;;  %v401_v10 = vadd.f32 %v400_v8, %v302_v52  ;;  %589 = vmatprep.subr.bf16.mxu1 %v646_v38  ;;  %vm416_vm0 = vcmp.gt.f32.partialorder %v398_v4, 0.0 }
 0x212   :  { %vm419_vm2 = vcmp.gt.f32.partialorder %v409_v7, 0.0  ;;  %v427_v11 = vmul.f32 0.01, %v409_v7  ;;  %v434_v13 = vsel %vm418_vm15, %v406_v1, %v426_v6 }
 0x213   :  { %vm417_vm3 = vcmp.gt.f32.partialorder %v401_v10, 0.0  ;;  %v425_v12 = vmul.f32 0.01, %v401_v10  ;;  %v432_v15 = vsel %vm416_vm0, %v398_v4, %v424_v9 }
 0x214   :  { %v435_v14 = vsel %vm419_vm2, %v409_v7, %v427_v11  ;;  %590 = vmatpush3.bf16.msra.mxu1 %v438_v61 }
 0x215   :  { %v440_v16 = vpack.c.bf16 %v435_v14, %v434_v13  ;;  %v433_v17 = vsel %vm417_vm3, %v401_v10, %v425_v12  ;;  %591 = vmatprep.subr.bf16.mxu1 %v646_v38 }
 0x216   :  { %v439_v18 = vpack.c.bf16 %v433_v17, %v432_v15 }
 0x218   :  { %592 = vmatpush3.bf16.msra.mxu1 %v439_v18 }
 0x219   :  { %593 = vmatprep.subr.bf16.mxu1 %v646_v38 }
 0x21c   :  { %594 = vmatpush3.bf16.msra.mxu1 %v440_v16 }
 0x21f   :  { %596 = vmatmul.mubr.msk.bf16.vlgmr.msra.gmra.mrb[8].mxu1 %vm334_vm1, %v436_v19 }
 0x2f2   :  { %v484_v21 = vpop.f32.mrb[8].mxu1 }
 0x2f3   :  { %v485_v22 = vadd.f32 %v484_v21, %v445_v20  ;;  %v597_v23 = vpop.f32.mrb[9].mxu1 }
 0x2f4   :  { %v487_v24 = vpop.f32.mrb[10].mxu1 }
 0x2f5   :  { %490 = vst [vmem:[#allocation2] sm:$0xf] %v485_v22  ;;  %v598_v25 = vpop.f32.mrb[11].mxu1 }
 0x2f6   :  { %632 = shalt.err (!%p629_p4)
}
 0x2f7   :  { %s633_s13 = scalar_lea.hbm %s859_s7, 64 }
 0x2f8   :  { %p634_p5 = scmp.ne.s32.totalorder %s859_s7, %s633_s13  ;;  %p637_p6 = scmp.lt.u32.totalorder %s633_s13, %s859_s7 }
 0x2fa   :  { %p639_p7 = pnand %p637_p6, %p634_p5 }
 0x2fc   :  { %642 = shalt.err (!%p639_p7)
}
 0x2fd   :  { %500 = dma.vmem_to_hbm [thread:$0]  %s498_s10, 64, %s859_s7, [#allocation3]  }
 0x2fe   :  { %643 = dma.done.wait [#allocation3], 64  }
 0x2ff   :  { %644 = vsyncadd [#allocation3], 4294967232 }
 0x300   :  { %504 = vsyncpa [#allocation3], 1 }

</bundles_post_ra>
